<compile_context>
chip_gen: v7x
topology: tpu7x:2x2x1
jax: 0.10.0
libtpu: 0.0.40
codegen_flags: <defaults>
</compile_context>

<pallas_src>
import functools

import jax
import jax.numpy as jnp
from jax.experimental import pallas as pl
from jax.experimental.pallas import tpu as pltpu


# ---------------------------------------------------------------------------
# Kernels
# ---------------------------------------------------------------------------
def _deconv_kernel_folded(xm_ref, xhalo_ref, w1_ref, w2_ref, o_ref, *,
                          TH, W, T, s2, Cin, Cout, slope):
    """Fast path (Cin % 128 == 0 and Cout % 128 == 0).

    xm_ref   : (TH, Wp, Cin)        bf16 rows of this H-tile
    xhalo_ref: (T-1, Wp, Cin)       bf16 halo rows just below the tile
    w1_ref   : (T*T*Cin, s2*Cin)    tap+phase folded 3x3 deconv weight
    w2_ref   : (Cin, Cout)          shared per-phase 1x1 weight
    o_ref    : (TH, W, s2*Cout)     bf16 phase-packed output tile
    """
    xa = jnp.concatenate([xm_ref[...], xhalo_ref[...]], axis=0)   # (TH+T-1, Wp, Cin)

    # im2col fold of the T*T taps along the channel (K) axis -> single MXU dot.
    taps = jnp.concatenate(
        [xa[oh:oh + TH, ow:ow + W, :] for oh in range(T) for ow in range(T)],
        axis=-1)                                                  # (TH, W, T*T*Cin)
    acc = jax.lax.dot_general(
        taps, w1_ref[...],
        dimension_numbers=(((2,), (0,)), ((), ())),
        preferred_element_type=jnp.float32)                       # (TH, W, s2*Cin)

    # Dropout is identity in eval mode.  LeakyReLU in fp32 on the accumulator.
    y = jnp.where(acc > 0, acc, slope * acc).astype(jnp.bfloat16)

    w2 = w2_ref[...]
    for p in range(s2):                                           # exact-FLOPs 1x1
        zp = jax.lax.dot_general(
            y[:, :, p * Cin:(p + 1) * Cin], w2,
            dimension_numbers=(((2,), (0,)), ((), ())),
            preferred_element_type=jnp.float32)                   # (TH, W, Cout)
        zp = jnp.where(zp > 0, zp, slope * zp)
        o_ref[:, :, p * Cout:(p + 1) * Cout] = zp.astype(o_ref.dtype)


def _deconv_kernel_padded(xm_ref, xhalo_ref, w1_ref, w2_ref, o_ref, *,
                          TH, W, T, slope):
    """Fallback path for small / non-lane-aligned channel counts.

    w1_ref: (T*T, Cin, s2*Cin)  per-tap phase-combined weight
    w2_ref: (s2*Cin, s2*Cout)   block-diagonal per-phase 1x1 weight
    """
    xa = jnp.concatenate([xm_ref[...], xhalo_ref[...]], axis=0)   # (TH+T-1, Wp, Cin)
    acc = None
    for oh in range(T):
        for ow in range(T):
            t = jax.lax.dot_general(
                xa[oh:oh + TH, ow:ow + W, :], w1_ref[oh * T + ow],
                dimension_numbers=(((2,), (0,)), ((), ())),
                preferred_element_type=jnp.float32)
            acc = t if acc is None else acc + t
    y = jnp.where(acc > 0, acc, slope * acc).astype(jnp.bfloat16)
    z = jax.lax.dot_general(
        y, w2_ref[...],
        dimension_numbers=(((2,), (0,)), ((), ())),
        preferred_element_type=jnp.float32)
    o_ref[...] = jnp.where(z > 0, z, slope * z).astype(o_ref.dtype)


# ---------------------------------------------------------------------------
# Wrapper
# ---------------------------------------------------------------------------
def deconv_forward(x_nchw, w1_pt, w2_pt, stride, slope=0.01, tile_h=None):
    """x_nchw: (N, Cin, H, W).  w1_pt: (Cin, Cin, 3, 3) ConvTranspose2d weight.
    w2_pt: (Cin, Cout, 1, 1).  Returns (N, Cout, H*stride, W*stride) fp32."""
    N, Cin, H, W = map(int, x_nchw.shape)
    Cout = int(w2_pt.shape[1])
    s = int(stride)
    assert s >= 1
    pt = 1 if s == 1 else 0        # top/left zero pad of the base input
    halo = pt + 1                  # extra rows needed below a tile
    T = halo + 1                   # taps per spatial dim after phase folding
    s2 = s * s
    Wp = W + halo
    aligned = (Cin % 128 == 0) and (Cout % 128 == 0)

    # ---- VMEM budget (chip aware) and H-tile size ----
    try:
        vmem_cap = int(pltpu.get_tpu_info().vmem_capacity_bytes)
    except Exception:
        vmem_cap = 64 << 20
    vmem_limit = min((vmem_cap * 3) // 4, 100 << 20)

    w_bytes = (T * T * Cin * s2 * Cin
               + (Cin * Cout if aligned else s2 * Cin * s2 * Cout)) * 2
    in_row = Wp * Cin * 2                      # bf16 input rows
    out_row = W * s2 * Cout * 2                # bf16 output rows
    tmp_row = (Wp * Cin * 2                    # xa copy
               + W * T * T * Cin * 2           # folded taps (bf16)
               + W * s2 * Cin * 6              # fp32 acc + bf16 y
               + W * s2 * Cout * 4)            # fp32 z temporaries
    per_row = 2 * in_row + 2 * out_row + (3 * tmp_row) // 2   # 2x = double buffer
    if tile_h is None:
        budget = max((vmem_limit * 3) // 5 - 2 * w_bytes, per_row)
        tile_h = max(1, budget // per_row)
        if tile_h >= 8:
            tile_h -= tile_h % 8               # sublane-friendly
    tile_h = int(tile_h)
    tile_h = max(tile_h, halo)
    tile_h += (-tile_h) % halo                 # halo block-index trick needs this
    tile_h = min(tile_h, H + (-H) % halo)
    nH = pl.cdiv(H, tile_h)
    Hpad = nH * tile_h                         # ragged H handled by zero padding

    # ---- glue (plain JAX): layout, padding, phase-folded weights ----
    x = jnp.transpose(x_nchw, (0, 2, 3, 1)).astype(jnp.bfloat16)      # NCHW -> NHWC
    # rows: pt (top) + H + (Hpad-H+1) (bottom) = Hpad + halo
    xh = jnp.pad(x, ((0, 0), (pt, Hpad - H + 1), (pt, 1), (0, 0)))    # (N, Hpad+halo, Wp, Cin)

    # Equivalent regular-conv weight: flip spatially, swap in/out channels.
    w1k = jnp.transpose(w1_pt[:, :, ::-1, ::-1], (2, 3, 0, 1)).astype(jnp.float32)
    # Phase-combined first-conv weight: (T, T, Cin, s2*Cin).
    w1big = jnp.zeros((T, T, Cin, s2 * Cin), jnp.float32)
    for ph in range(s):
        for pw in range(s):
            p = ph * s + pw
            for kh in range(3):
                if (ph + kh - 1) % s:
                    continue
                dh = (ph + kh - 1) // s
                for kw in range(3):
                    if (pw + kw - 1) % s:
                        continue
                    dw = (pw + kw - 1) // s
                    w1big = w1big.at[dh + pt, dw + pt, :,
                                     p * Cin:(p + 1) * Cin].set(w1k[kh, kw])

    if aligned:
        w1_arr = w1big.reshape(T * T * Cin, s2 * Cin).astype(jnp.bfloat16)
        w2_arr = w2_pt[:, :, 0, 0].astype(jnp.bfloat16)               # (Cin, Cout)
        kernel = functools.partial(_deconv_kernel_folded, TH=tile_h, W=W, T=T,
                                   s2=s2, Cin=Cin, Cout=Cout, slope=slope)
        w_specs = [pl.BlockSpec((T * T * Cin, s2 * Cin), lambda n, i: (0, 0)),
                   pl.BlockSpec((Cin, Cout), lambda n, i: (0, 0))]
    else:
        w1_arr = w1big.reshape(T * T, Cin, s2 * Cin).astype(jnp.bfloat16)
        w2 = w2_pt[:, :, 0, 0].astype(jnp.float32)
        w2big = jnp.zeros((s2 * Cin, s2 * Cout), jnp.float32)
        for p in range(s2):
            w2big = w2big.at[p * Cin:(p + 1) * Cin,
                             p * Cout:(p + 1) * Cout].set(w2)
        w2_arr = w2big.astype(jnp.bfloat16)
        kernel = functools.partial(_deconv_kernel_padded, TH=tile_h, W=W, T=T,
                                   slope=slope)
        w_specs = [pl.BlockSpec((T * T, Cin, s2 * Cin), lambda n, i: (0, 0, 0)),
                   pl.BlockSpec((s2 * Cin, s2 * Cout), lambda n, i: (0, 0))]

    th_over_halo = tile_h // halo
    flops = 2 * N * Hpad * W * (T * T * Cin * s2 * Cin + s2 * Cin * Cout)
    bytes_accessed = (N * (Hpad + nH * halo) * Wp * Cin * 2
                      + int(w1_arr.size) * 2 + int(w2_arr.size) * 2
                      + N * Hpad * W * s2 * Cout * 2)

    out_pp = pl.pallas_call(
        kernel,
        out_shape=jax.ShapeDtypeStruct((N, Hpad, W, s2 * Cout), jnp.bfloat16),
        grid=(N, nH),
        in_specs=[
            # main rows of the tile
            pl.BlockSpec((None, tile_h, Wp, Cin), lambda n, i: (n, i, 0, 0)),
            # halo rows below the tile -- second view of the SAME padded input
            pl.BlockSpec((None, halo, Wp, Cin),
                         lambda n, i: (n, (i + 1) * th_over_halo, 0, 0)),
            *w_specs,
        ],
        out_specs=pl.BlockSpec((None, tile_h, W, s2 * Cout),
                               lambda n, i: (n, i, 0, 0)),
        compiler_params=pltpu.CompilerParams(
            dimension_semantics=("parallel", "parallel"),
            vmem_limit_bytes=int(vmem_limit)),
        cost_estimate=pl.CostEstimate(flops=flops, transcendentals=0,
                                      bytes_accessed=bytes_accessed),
    )(xh, xh, w1_arr, w2_arr)

    # Drop ragged pad rows; depth-to-space (phase unpack) folded into the
    # NHWC->NCHW output transpose (bf16 read, fp32 write fused by XLA).
    out = out_pp[:, :H].reshape(N, H, W, s, s, Cout)
    out = jnp.transpose(out, (0, 5, 1, 3, 2, 4)).reshape(N, Cout, H * s, W * s)
    return out.astype(jnp.float32)


# ---------------------------------------------------------------------------
# Independent plain-JAX reference (zero-dilate + pad formulation), same
# precision recipe as the kernel (bf16 matmul inputs, fp32 accumulation).
# ---------------------------------------------------------------------------
def _reference(x_nchw, w1_pt, w2_pt, stride, slope=0.01):
    N, Cin, H, W = x_nchw.shape
    s = int(stride)
    Hout, Wout = H * s, W * s
    x = jnp.transpose(x_nchw, (0, 2, 3, 1)).astype(jnp.bfloat16)
    xd = jnp.zeros((N, (H - 1) * s + 1, (W - 1) * s + 1, Cin), jnp.bfloat16)
    xd = xd.at[:, ::s, ::s, :].set(x)
    xp = jnp.pad(xd, ((0, 0), (1, s), (1, s), (0, 0)))
    w1k = jnp.transpose(w1_pt[:, :, ::-1, ::-1], (2, 3, 0, 1)).astype(jnp.bfloat16)
    acc = jnp.zeros((N, Hout, Wout, Cin), jnp.float32)
    for kh in range(3):
        for kw in range(3):
            acc = acc + jnp.einsum("nhwc,cd->nhwd",
                                   xp[:, kh:kh + Hout, kw:kw + Wout, :], w1k[kh, kw],
                                   preferred_element_type=jnp.float32)
    y = jnp.where(acc > 0, acc, slope * acc)
    z = jnp.einsum("nhwc,cd->nhwd", y.astype(jnp.bfloat16),
                   w2_pt[:, :, 0, 0].astype(jnp.bfloat16),
                   preferred_element_type=jnp.float32)
    z = jnp.where(z > 0, z, slope * z)
    return jnp.transpose(z, (0, 3, 1, 2))


if __name__ == "__main__":
    def run_case(name, N, Cin, Cout, H, W, stride, tile_h, atol):
        kx, k1, k2 = jax.random.split(jax.random.PRNGKey(0), 3)
        x = jax.random.normal(kx, (N, Cin, H, W), dtype=jnp.float32)
        # ConvTranspose2d weight shapes: (in_channels, out_channels, kH, kW)
        w1 = 0.1 * jax.random.normal(k1, (Cin, Cin, 3, 3), dtype=jnp.float32)
        w2 = 0.1 * jax.random.normal(k2, (Cin, Cout, 1, 1), dtype=jnp.float32)
        fwd = jax.jit(functools.partial(deconv_forward, stride=stride, tile_h=tile_h))
        out = jax.block_until_ready(fwd(x, w1, w2))
        assert out.shape == (N, Cout, H * stride, W * stride), (name, out.shape)
        ref = _reference(x, w1, w2, stride)
        err = float(jnp.max(jnp.abs(out - ref)))
        assert err <= atol, (name, err)

    # Primary config: batch=2, inp=4, oup=8, spatial=16, stride=2.
    run_case("s2_tiled",   2, 4,   8,   16, 16, 2, 8,    5e-3)  # 2 H-tiles -> halo path
    run_case("s2_auto",    2, 4,   8,   16, 16, 2, None, 5e-3)  # auto tile / VMEM heuristic
    run_case("s1_ragged",  2, 4,   8,   16, 16, 1, 6,    5e-3)  # stride-1, ragged H tiles
    run_case("s2_aligned", 1, 128, 128, 8,  8,  2, 4,    6e-2)  # lane-aligned fast path
    print("KERNEL_OK")
</pallas_src>

<mosaic_0001>
module attributes {stable_mosaic.version = 11 : i64} {
  func.func @_deconv_kernel_padded(%arg0: i32, %arg1: i32, %arg2: memref<1x8x17x4xbf16, #tpu.memory_space<vmem>>, %arg3: memref<1x1x17x4xbf16, #tpu.memory_space<vmem>>, %arg4: memref<4x4x16xbf16, #tpu.memory_space<vmem>>, %arg5: memref<16x32xbf16, #tpu.memory_space<vmem>>, %arg6: memref<1x8x16x32xbf16, #tpu.memory_space<vmem>>) attributes {dimension_semantics = [#tpu.dimension_semantics<parallel>, #tpu.dimension_semantics<parallel>], iteration_bounds = array<i64: 2, 2>, scalar_prefetch = 0 : i64, scratch_operands = 0 : i64, tpu.core_type = #tpu.core_type<tc>, window_params = [{transform_indices = @transform_0, window_bounds = array<i64: 1, 8, 17, 4>}, {transform_indices = @transform_1, window_bounds = array<i64: 1, 1, 17, 4>}, {pipeline_mode = #tpu.pipeline_mode<synchronous>, transform_indices = @transform_2, window_bounds = array<i64: 4, 4, 16>}, {pipeline_mode = #tpu.pipeline_mode<synchronous>, transform_indices = @transform_3, window_bounds = array<i64: 16, 32>}, {transform_indices = @transform_4, window_bounds = array<i64: 1, 8, 16, 32>}]} {
    %c0 = arith.constant 0 : index
    %c0_0 = arith.constant 0 : index
    %c0_1 = arith.constant 0 : index
    %c0_2 = arith.constant 0 : index
    %0 = vector.load %arg2[%c0, %c0_0, %c0_1, %c0_2] : memref<1x8x17x4xbf16, #tpu.memory_space<vmem>>, vector<1x8x17x4xbf16>
    %1 = vector.shape_cast %0 : vector<1x8x17x4xbf16> to vector<8x17x4xbf16>
    %c0_3 = arith.constant 0 : index
    %c0_4 = arith.constant 0 : index
    %c0_5 = arith.constant 0 : index
    %c0_6 = arith.constant 0 : index
    %2 = vector.load %arg3[%c0_3, %c0_4, %c0_5, %c0_6] : memref<1x1x17x4xbf16, #tpu.memory_space<vmem>>, vector<1x1x17x4xbf16>
    %3 = vector.shape_cast %2 : vector<1x1x17x4xbf16> to vector<1x17x4xbf16>
    %4 = tpu.concatenate %1, %3 in 0 : vector<8x17x4xbf16>, vector<1x17x4xbf16> -> vector<9x17x4xbf16>
    %5 = vector.extract_strided_slice %4 {offsets = [0, 0, 0], sizes = [8, 16, 4], strides = [1, 1, 1]} : vector<9x17x4xbf16> to vector<8x16x4xbf16>
    %c0_7 = arith.constant 0 : index
    %c0_8 = arith.constant 0 : index
    %c0_9 = arith.constant 0 : index
    %6 = vector.load %arg4[%c0_7, %c0_8, %c0_9] : memref<4x4x16xbf16, #tpu.memory_space<vmem>>, vector<1x4x16xbf16>
    %7 = vector.shape_cast %6 : vector<1x4x16xbf16> to vector<4x16xbf16>
    %cst = arith.constant dense<0.000000e+00> : vector<8x16x16xf32>
    %8 = tpu.matmul %5, %7, %cst {dimension_numbers = #tpu.dot_dimension_numbers<[2], [0], [0, 1], [1], [0, 0, 0, 1, 1, 1], [], []>} : vector<8x16x4xbf16>, vector<4x16xbf16>, vector<8x16x16xf32> -> vector<8x16x16xf32>
    %9 = vector.extract_strided_slice %4 {offsets = [0, 1, 0], sizes = [8, 16, 4], strides = [1, 1, 1]} : vector<9x17x4xbf16> to vector<8x16x4xbf16>
    %c1 = arith.constant 1 : index
    %c0_10 = arith.constant 0 : index
    %c0_11 = arith.constant 0 : index
    %10 = vector.load %arg4[%c1, %c0_10, %c0_11] : memref<4x4x16xbf16, #tpu.memory_space<vmem>>, vector<1x4x16xbf16>
    %11 = vector.shape_cast %10 : vector<1x4x16xbf16> to vector<4x16xbf16>
    %cst_12 = arith.constant dense<0.000000e+00> : vector<8x16x16xf32>
    %12 = tpu.matmul %9, %11, %cst_12 {dimension_numbers = #tpu.dot_dimension_numbers<[2], [0], [0, 1], [1], [0, 0, 0, 1, 1, 1], [], []>} : vector<8x16x4xbf16>, vector<4x16xbf16>, vector<8x16x16xf32> -> vector<8x16x16xf32>
    %13 = arith.addf %8, %12 : vector<8x16x16xf32>
    %14 = vector.extract_strided_slice %4 {offsets = [1, 0, 0], sizes = [8, 16, 4], strides = [1, 1, 1]} : vector<9x17x4xbf16> to vector<8x16x4xbf16>
    %c2 = arith.constant 2 : index
    %c0_13 = arith.constant 0 : index
    %c0_14 = arith.constant 0 : index
    %15 = vector.load %arg4[%c2, %c0_13, %c0_14] : memref<4x4x16xbf16, #tpu.memory_space<vmem>>, vector<1x4x16xbf16>
    %16 = vector.shape_cast %15 : vector<1x4x16xbf16> to vector<4x16xbf16>
    %cst_15 = arith.constant dense<0.000000e+00> : vector<8x16x16xf32>
    %17 = tpu.matmul %14, %16, %cst_15 {dimension_numbers = #tpu.dot_dimension_numbers<[2], [0], [0, 1], [1], [0, 0, 0, 1, 1, 1], [], []>} : vector<8x16x4xbf16>, vector<4x16xbf16>, vector<8x16x16xf32> -> vector<8x16x16xf32>
    %18 = arith.addf %13, %17 : vector<8x16x16xf32>
    %19 = vector.extract_strided_slice %4 {offsets = [1, 1, 0], sizes = [8, 16, 4], strides = [1, 1, 1]} : vector<9x17x4xbf16> to vector<8x16x4xbf16>
    %c3 = arith.constant 3 : index
    %c0_16 = arith.constant 0 : index
    %c0_17 = arith.constant 0 : index
    %20 = vector.load %arg4[%c3, %c0_16, %c0_17] : memref<4x4x16xbf16, #tpu.memory_space<vmem>>, vector<1x4x16xbf16>
    %21 = vector.shape_cast %20 : vector<1x4x16xbf16> to vector<4x16xbf16>
    %cst_18 = arith.constant dense<0.000000e+00> : vector<8x16x16xf32>
    %22 = tpu.matmul %19, %21, %cst_18 {dimension_numbers = #tpu.dot_dimension_numbers<[2], [0], [0, 1], [1], [0, 0, 0, 1, 1, 1], [], []>} : vector<8x16x4xbf16>, vector<4x16xbf16>, vector<8x16x16xf32> -> vector<8x16x16xf32>
    %23 = arith.addf %18, %22 : vector<8x16x16xf32>
    %cst_19 = arith.constant 0.000000e+00 : f32
    %24 = vector.broadcast %cst_19 : f32 to vector<8x16x16xf32>
    %25 = arith.cmpf ogt, %23, %24 : vector<8x16x16xf32>
    %cst_20 = arith.constant 0.00999999977 : f32
    %26 = vector.broadcast %cst_20 : f32 to vector<8x16x16xf32>
    %27 = arith.mulf %26, %23 : vector<8x16x16xf32>
    %28 = arith.select %25, %23, %27 : vector<8x16x16xi1>, vector<8x16x16xf32>
    %29 = arith.truncf %28 : vector<8x16x16xf32> to vector<8x16x16xbf16>
    %c0_21 = arith.constant 0 : index
    %c0_22 = arith.constant 0 : index
    %30 = vector.load %arg5[%c0_21, %c0_22] : memref<16x32xbf16, #tpu.memory_space<vmem>>, vector<16x32xbf16>
    %cst_23 = arith.constant dense<0.000000e+00> : vector<8x16x32xf32>
    %31 = tpu.matmul %29, %30, %cst_23 {dimension_numbers = #tpu.dot_dimension_numbers<[2], [0], [0, 1], [1], [0, 0, 0, 1, 1, 1], [], []>} : vector<8x16x16xbf16>, vector<16x32xbf16>, vector<8x16x32xf32> -> vector<8x16x32xf32>
    %cst_24 = arith.constant 0.000000e+00 : f32
    %32 = vector.broadcast %cst_24 : f32 to vector<8x16x32xf32>
    %33 = arith.cmpf ogt, %31, %32 : vector<8x16x32xf32>
    %cst_25 = arith.constant 0.00999999977 : f32
    %34 = vector.broadcast %cst_25 : f32 to vector<8x16x32xf32>
    %35 = arith.mulf %34, %31 : vector<8x16x32xf32>
    %36 = arith.select %33, %31, %35 : vector<8x16x32xi1>, vector<8x16x32xf32>
    %37 = arith.truncf %36 : vector<8x16x32xf32> to vector<8x16x32xbf16>
    %c0_26 = arith.constant 0 : index
    %c0_27 = arith.constant 0 : index
    %c0_28 = arith.constant 0 : index
    %c0_29 = arith.constant 0 : index
    %38 = vector.load %arg6[%c0_26, %c0_27, %c0_28, %c0_29] : memref<1x8x16x32xbf16, #tpu.memory_space<vmem>>, vector<1x8x16x32xbf16>
    %39 = vector.shape_cast %38 : vector<1x8x16x32xbf16> to vector<8x16x32xbf16>
    %40 = vector.shape_cast %37 : vector<8x16x32xbf16> to vector<1x8x16x32xbf16>
    tpu.vector_store %arg6[%c0_26, %c0_27, %c0_28, %c0_29], %40 {strides = array<i32>} : memref<1x8x16x32xbf16, #tpu.memory_space<vmem>>, vector<1x8x16x32xbf16>,
    return
  }
  func.func @transform_0(%arg0: i32, %arg1: i32) -> (i32, i32, i32, i32) {
    %c0_i32 = arith.constant 0 : i32
    %c0_i32_0 = arith.constant 0 : i32
    %c0_i32_1 = arith.constant 0 : i32
    return %arg0, %arg1, %c0_i32, %c0_i32_0 : i32, i32, i32, i32
  }
  func.func @transform_1(%arg0: i32, %arg1: i32) -> (i32, i32, i32, i32) {
    %c1_i32 = arith.constant 1 : i32
    %0 = arith.addi %arg1, %c1_i32 : i32
    %c8_i32 = arith.constant 8 : i32
    %1 = arith.muli %0, %c8_i32 : i32
    %c0_i32 = arith.constant 0 : i32
    %c0_i32_0 = arith.constant 0 : i32
    %c0_i32_1 = arith.constant 0 : i32
    return %arg0, %1, %c0_i32, %c0_i32_0 : i32, i32, i32, i32
  }
  func.func @transform_2(%arg0: i32, %arg1: i32) -> (i32, i32, i32) {
    %c0_i32 = arith.constant 0 : i32
    %c0_i32_0 = arith.constant 0 : i32
    %c0_i32_1 = arith.constant 0 : i32
    %c0_i32_2 = arith.constant 0 : i32
    return %c0_i32, %c0_i32_0, %c0_i32_1 : i32, i32, i32
  }
  func.func @transform_3(%arg0: i32, %arg1: i32) -> (i32, i32) {
    %c0_i32 = arith.constant 0 : i32
    %c0_i32_0 = arith.constant 0 : i32
    %c0_i32_1 = arith.constant 0 : i32
    return %c0_i32, %c0_i32_0 : i32, i32
  }
  func.func @transform_4(%arg0: i32, %arg1: i32) -> (i32, i32, i32, i32) {
    %c0_i32 = arith.constant 0 : i32
    %c0_i32_0 = arith.constant 0 : i32
    %c0_i32_1 = arith.constant 0 : i32
    return %arg0, %arg1, %c0_i32, %c0_i32_0 : i32, i32, i32, i32
  }
}

</mosaic_0001>

<bundles_post_ra>
// kernel: deconv_forward.1
= control target key start
LH: loop header
LB: loop body
LE: loop exit
PB: predicated region body
PF: predicated region fallthrough
CT: control target
= control target key end

     0   :  { %s1989_s15 = smov 0   ;;  %s1991_s16 = smov 0   ;;  %s2297_s0 = inlined_call_operand.vmem [shape: bf16[2,17,17,4], index: 0, kind: input, shape index: {}, may-alias: {0,1}]   ;;  %s2298_s1 = inlined_call_operand.vmem [shape: bf16[2,17,17,4], index: 1, kind: input, shape index: {}, may-alias: {0,1}]   ;;  %s2299_s2 = inlined_call_operand.vmem [shape: bf16[4,4,16], index: 2, kind: input, shape index: {}]   ;;  %s2300_s3 = inlined_call_operand.vmem [shape: bf16[16,32], index: 3, kind: input, shape index: {}]   ;;  %s2301_s4 = inlined_call_operand.vmem [shape: bf16[2,16,16,32], index: 4, kind: output, shape index: {}]  }
   0x1   :  { %s1993_s17 = smov 0   ;;  %s1995_s18 = smov 0  }
   0x2   :  { %s1997_s19 = smov 0  }
   0x3 LB: > { %s23_s20 = sadd.s32 1, %s1954_s17  ;;  %s26_s21 = sadd.s32 1, %s1958_s18  ;;  %s1962_s19 = sphi %s1997_s19, %s14_s19   ;;  %s1958_s18 = sphi %s1995_s18, %s2308_s18   ;;  %s1954_s17 = sphi %s1993_s17, %s2307_s17   ;;  %s1950_s16 = sphi %s1991_s16, %s2306_s16   ;;  %s1946_s15 = sphi %s1989_s15, %s2305_s15  }
   0x4   : > { %p24_p0 = scmp.ge.s32.totalorder %s23_s20, 2  ;;  %p1570_p1 = scmp.ge.s32.totalorder %s1962_s19, 1 }
   0x5   : > { %p218_p2 = scmp.lt.s32.totalorder %s1962_s19, 5 }
   0x6   : > { %s2310_s20 = smov (%p24_p0, %s23_s20), 0  ;;  %s2312_s21 = smov (!%p24_p0, %s26_s21), %s1958_s18 }
   0x7   : > { %p219_p3 = pnand %p1570_p1, %p218_p2  ;;  %p28_p4 = scmp.ge.s32.totalorder %s2312_s21, 2 }
   0x8   : > { %v343_v0 = vld [vmem:[%s2299_s2] sm:$0x3] (!%p219_p3)  ;;  %vm590_vm0 = vcmask (!%p219_p3), 1041408   ;;  %s2022_s24 = sshll.u32 (!%p219_p3), %s1946_s15, 3  ;;  %p276_p5 = scmp.lt.s32.totalorder (!%p219_p3), %s1950_s16, 1  ;;  %vm565_vm1 = vcmask (!%p219_p3), 31744  }
   0x9   : > { %s2314_s21 = smov (%p28_p4, %s2312_s21), 0  ;;  %222 = sbr.rel (%p219_p3) target bundleno = 547 (0x223), region = 36 }
   0xa   : > { %1867 = vmatprep.subr.msk.bf16.mxu0 (!%p219_p3), %vm590_vm0, %v343_v0  ;;  %v2026_v1 = vsel (!%p219_p3), %vm590_vm0, %v343_v0, 0  ;;  %p278_p6 = scmp.lt.s32.totalorder (!%p219_p3), %s2022_s24, 16  ;;  %v1612_v2 = vld [vmem:[%s2299_s2 + $0x4] sm:$0x3] (!%p219_p3)  ;;  %v1579_v3 = vld [vmem:[%s2299_s2 + $0x2] sm:$0x3] (!%p219_p3) }
   0xb   : > { %1745 = vmatpush3.bf16.msra.mxu0 (!%p219_p3), %v2026_v1  ;;  %1866 = vmatprep.subr.msk.bf16.mxu1 (!%p219_p3), %vm590_vm0, %v1579_v3  ;;  %v592_v4 = vsel (!%p219_p3), %vm590_vm0, %v1579_v3, 0  ;;  %v866_v5 = vsel (!%p219_p3), %vm590_vm0, %v1612_v2, 0  ;;  %vm346_vm2 = vsmask.f32 (!%p219_p3), 3328  ;;  %vm347_vm3 = vsmask.f32 (!%p219_p3), 7440 }
   0xc   : > { %1869 = vmatprep.subr.msk.bf16.mxu0 (!%p219_p3), %vm590_vm0, %v1612_v2  ;;  %1727 = vmatpush3.bf16.msra.mxu1 (!%p219_p3), %v592_v4  ;;  %v2064_v28 = vld [vmem:[%s2299_s2 + $0x6] sm:$0x3] (!%p219_p3)  ;;  %vm2082_vm4 = vmor (!%p219_p3), %vm346_vm2, %vm347_vm3  ;;  %s1664_s13 = sadd.s32 (!%p219_p3), 8, %s2022_s24  ;;  %vm1193_vm9 = vcmask (!%p219_p3), 130048   ;;  %p307_p8 = scmp.lt.s32.totalorder (!%p219_p3), %s2022_s24, 15 }
   0xd   : > { %1868 = vmatprep.subr.msk.bf16.mxu1 (!%p219_p3), %vm590_vm0, %v343_v0  ;;  %p2122_p7 = scmp.lt.s32.totalorder (!%p219_p3), %s1664_s13, 16 }
  0x10   : > { %s2316_s16 = smov (!%p276_p5, %s1950_s16), 1  ;;  %s2318_s13 = smov (!%p2122_p7, %s1664_s13), 16 }
  0x11   : > { %s279_s29 = scalar_select %p278_p6, %s2022_s24, 16 }
  0x12   : > { %s1872_s30 = smul.u32 51, %s2316_s16  ;;  %s2320_s24 = smov (!%p307_p8, %s2022_s24), 15 }
  0x13   : > { %s1871_s5 = smul.u32 3, %s279_s29 }
  0x14   : > { %s1873_s15 = smul.u32 3, %s2318_s13 }
  0x15   : > { %s282_s6 = sadd.s32 %s1872_s30, %s1871_s5  ;;  %s1577_s5 = sshll.u32 %s2316_s16, 5 }
  0x16   : > { %s1572_s7 = sshll.u32 %s282_s6, 2  ;;  %s299_s22 = sadd.s32 %s1873_s15, %s1872_s30 }
  0x17   : > { %s2049_s10 = scalar_lea.vmem %s2297_s0, %s1572_s7  ;;  %s1574_s23 = sshll.u32 %s299_s22, 2 }
  0x18   : > { %v316_v6 = vld [vmem:[%s2049_s10] sm:$0xf]  ;;  %v317_v7 = vld [vmem:[%s2049_s10 + $0x4] sm:$0xf]  ;;  %v319_v8 = vld [vmem:[%s2049_s10 + $0xc] sm:$0xf]  ;;  %s301_s27 = scalar_lea.vmem %s2298_s1, %s1574_s23 }
  0x19   : > { %v350_v9 = vshrl.u32 %v316_v6, 16  ;;  %v353_v10 = vshll.u32 %v316_v6, 16  ;;  %v359_v11 = vshll.u32 %v317_v7, 16  ;;  %v363_v12 = vshrl.u32 %v317_v7, 16  ;;  %v320_v13 = vld [vmem:[%s2049_s10 + $0x10] sm:$0xf] }
  0x1a   : > { %v1596_v14 = vcombine.low %v316_v6, %v317_v7  ;;  %v374_v15 = vshrl.u32 %v319_v8, 16  ;;  %v377_v16 = vshll.u32 %v319_v8, 16  ;;  %v383_v17 = vshll.u32 %v320_v13, 16  ;;  %v322_v18 = vld [vmem:[%s2049_s10 + $0x18] sm:$0xf]  ;;  %s1576_s30 = sshll.u32 %s2320_s24, 1 }
  0x1b   : > { %v352_v19 = vrot.slane %v350_v9, 4  ;;  %v355_v20 = vrot.slane %v353_v10, 5  ;;  %v2057_v21 = vrot.slane %v359_v11, 5  ;;  %v365_v22 = vrot.slane %v363_v12, 4  ;;  %v323_v23 = vld [vmem:[%s2049_s10 + $0x1c] sm:$0xf]  ;;  %s311_s6 = sadd.s32 %s1577_s5, %s1576_s30 }
  0x1c   : > { %1746 = vmatprep.mubr.msk.bf16.mxu0 %vm565_vm1, %v1596_v14  ;;  %v376_v24 = vrot.slane %v374_v15, 4  ;;  %v379_v25 = vrot.slane %v377_v16, 5  ;;  %v385_v26 = vrot.slane %v383_v17, 5  ;;  %v387_v27 = vshrl.u32 %v320_v13, 16  ;;  %v325_v33 = vld [vmem:[%s2049_s10 + $0x24] sm:$0xf] }
  0x1d   : > { %v1597_v29 = vcombine.low %v319_v8, %v320_v13  ;;  %v398_v30 = vshrl.u32 %v322_v18, 16  ;;  %v401_v31 = vshll.u32 %v322_v18, 16  ;;  %v407_v32 = vshll.u32 %v323_v23, 16  ;;  %v326_v37 = vld [vmem:[%s2049_s10 + $0x28] sm:$0xf]  ;;  %s1578_s7 = sshll.u32 %s311_s6, 2 }
  0x1e   : > { %v389_v34 = vrot.slane %v387_v27, 4  ;;  %v411_v35 = vshrl.u32 %v323_v23, 16  ;;  %v2067_v36 = vcombine.low %v322_v18, %v323_v23  ;;  %v422_v38 = vshrl.u32 %v325_v33, 16  ;;  %v318_v43 = vld [vmem:[%s2049_s10 + $0x8] sm:$0x1] }
  0x1f   : > { %1747 = vmatmul.mubr.msk.bf16.vlgmr.msra.gmra.mrb[0].mxu0 %vm565_vm1, %v1597_v29  ;;  %v400_v39 = vrot.slane %v398_v30, 4  ;;  %v403_v40 = vrot.slane %v401_v31, 5  ;;  %v409_v41 = vrot.slane %v407_v32, 5  ;;  %v425_v42 = vshll.u32 %v325_v33, 16  ;;  %v321_v48 = vld [vmem:[%s2049_s10 + $0x14] sm:$0x1] }
  0x20   : > { %1763 = vmatpush3.bf16.msra.mxu0 %v866_v5  ;;  %v413_v44 = vrot.slane %v411_v35, 4  ;;  %1750 = vmatprep.mubr.msk.bf16.mxu0 %vm565_vm1, %v2067_v36  ;;  %v424_v45 = vrot.slane %v422_v38, 4  ;;  %v431_v46 = vshll.u32 %v326_v37, 16  ;;  %v435_v47 = vshrl.u32 %v326_v37, 16  ;;  %v324_v58 = vld [vmem:[%s2049_s10 + $0x20] sm:$0x1] }
  0x21   : > { %v427_v49 = vrot.slane %v425_v42, 5  ;;  %v2075_v50 = vcombine.low %v325_v33, %v326_v37  ;;  %v356_v51 = vor.u32 %v355_v20, %v352_v19  ;;  %v366_v52 = vor.u32 %v365_v22, %v2057_v21  ;;  %1870 = vmatprep.subr.msk.bf16.mxu0 %vm590_vm0, %v2064_v28  ;;  %v327_v8 = vld [vmem:[%s2049_s10 + $0x2c] sm:$0x1]  ;;  %v328_v13 = vld [vmem:[%s2049_s10 + $0x30] sm:$0xf] }
  0x22   : > { %v433_v53 = vrot.slane %v431_v46, 5  ;;  %v437_v54 = vrot.slane %v435_v47, 4  ;;  %v369_v56 = vshll.u32 %v318_v43, 16  ;;  %v380_v57 = vor.u32 %v379_v25, %v376_v24  ;;  %v329_v18 = vld [vmem:[%s2049_s10 + $0x34] sm:$0xf] }
  0x23   : > { %v357_v59 = vrot.slane %v356_v51, 4  ;;  %v367_v60 = vrot.slane %v366_v52, 4  ;;  %v390_v61 = vor.u32 %v389_v34, %v385_v26  ;;  %v393_v62 = vshll.u32 %v321_v48, 16  ;;  %v330_v27 = vld [vmem:[%s2049_s10 + $0x38] sm:$0x1] }
  0x24   : > { %v371_v63 = vrot.slane %v369_v56, 5  ;;  %v381_v0 = vrot.slane %v380_v57, 4  ;;  %v404_v2 = vor.u32 %v403_v40, %v400_v39  ;;  %v414_v3 = vor.u32 %v413_v44, %v409_v41  ;;  %v331_v33 = vld [vmem:[%s2049_s10 + $0x3c] sm:$0xf]  ;;  %v332_v39 = vld [vmem:[%s2049_s10 + $0x40] sm:$0xf] }
  0x25   : > { %v362_v4 = vsel %vm2082_vm4, %v357_v59, %v2057_v21  ;;  %v391_v5 = vrot.slane %v390_v61, 4  ;;  %v395_v6 = vrot.slane %v393_v62, 5  ;;  %v417_v7 = vshll.u32 %v324_v58, 16  ;;  %v333_v44 = vld [vmem:[%s2049_s10 + $0x44] sm:$0x1] }
  0x26   : > { %v372_v9 = vsel %vm2082_vm4, %v367_v60, %v371_v63  ;;  %v386_v10 = vsel %vm2082_vm4, %v381_v0, %v385_v26  ;;  %v405_v11 = vrot.slane %v404_v2, 4  ;;  %v415_v12 = vrot.slane %v414_v3, 4  ;;  %v2136_v52 = vld [vmem:[%s2049_s10 + $0x48] sm:$0xf]  ;;  %v335_v58 = vld [vmem:[%s2049_s10 + $0x4c] sm:$0xf] }
  0x27   : > { %1751 = vmatmul.mubr.msk.bf16.gmra.mrb[4].mxu0 %vm565_vm1, %v2075_v50  ;;  %v1580_v14 = vcombine.low %v362_v4, %v372_v9  ;;  %v396_v15 = vsel %vm2082_vm4, %v391_v5, %v395_v6  ;;  %v419_v16 = vrot.slane %v417_v7, 5  ;;  %v428_v17 = vor.u32 %v427_v49, %v424_v45  ;;  %v336_v6 = vld [vmem:[%s2049_s10 + $0x50] sm:$0x1]  ;;  %v337_v7 = vld [vmem:[%s2049_s10 + $0x54] sm:$0xf] }
  0x28   : > { %v2101_v19 = vcombine.low %v386_v10, %v396_v15  ;;  %1764 = vmatprep.mubr.msk.bf16.mxu0 %vm565_vm1, %v1597_v29  ;;  %v410_v20 = vsel %vm2082_vm4, %v405_v11, %v409_v41  ;;  %v438_v21 = vor.u32 %v437_v54, %v433_v53  ;;  %v441_v22 = vshll.u32 %v327_v8, 16 }
  0x29   : > { %1728 = vmatprep.mubr.msk.bf16.mxu1 %vm565_vm1, %v1580_v14  ;;  %v420_v23 = vsel %vm2082_vm4, %v415_v12, %v419_v16  ;;  %v429_v24 = vrot.slane %v428_v17, 4  ;;  %v446_v25 = vshrl.u32 %v328_v13, 16  ;;  %v449_v26 = vshll.u32 %v328_v13, 16 }
  0x2a   : > { %1729 = vmatmul.mubr.msk.bf16.vlgmr.msra.gmra.mrb[0].mxu1 %vm565_vm1, %v2101_v19  ;;  %v2113_v29 = vcombine.low %v410_v20, %v420_v23  ;;  %v439_v30 = vrot.slane %v438_v21, 4  ;;  %v443_v31 = vrot.slane %v441_v22, 5  ;;  %v455_v32 = vshll.u32 %v329_v18, 16  ;;  %v338_v20 = vld [vmem:[%s2049_s10 + $0x58] sm:$0xf] }
  0x2b   : > { %v434_v34 = vsel %vm2082_vm4, %v429_v24, %v433_v53  ;;  %v448_v35 = vrot.slane %v446_v25, 4  ;;  %v451_v37 = vrot.slane %v449_v26, 5  ;;  %v459_v38 = vshrl.u32 %v329_v18, 16  ;;  %1817 = vmatpush3.bf16.msra.mxu1 %v2026_v1  ;;  %v339_v25 = vld [vmem:[%s2049_s10 + $0x5c] sm:$0x1]  ;;  %s2248_s10 = scalar_lea.vmem %s2301_s4, %s1578_s7 }
  0x2c   : > { %v1014_v40 = vsel %vm590_vm0, %v2064_v28, 0  ;;  %1732 = vmatprep.mubr.msk.bf16.mxu1 %vm565_vm1, %v2113_v29  ;;  %v444_v41 = vsel %vm2082_vm4, %v439_v30, %v443_v31  ;;  %v457_v42 = vrot.slane %v455_v32, 5  ;;  %v465_v43 = vshll.u32 %v330_v27, 16 }
  0x2d   : > { %v2133_v1 = vcombine.low %v434_v34, %v444_v41  ;;  %v461_v45 = vrot.slane %v459_v38, 4  ;;  %v452_v46 = vor.u32 %v451_v37, %v448_v35  ;;  %v470_v47 = vshrl.u32 %v331_v33, 16 }
  0x2e   : > { %v467_v48 = vrot.slane %v465_v43, 5  ;;  %v473_v49 = vshll.u32 %v331_v33, 16  ;;  %v479_v28 = vshll.u32 %v332_v39, 16  ;;  %v483_v51 = vshrl.u32 %v332_v39, 16 }
  0x2f   : > { %1765 = vmatmul.mubr.msk.bf16.vlgmr.msra.gmra.mrb[0].mxu0 %vm565_vm1, %v2067_v36  ;;  %v453_v53 = vrot.slane %v452_v46, 4  ;;  %v462_v54 = vor.u32 %v461_v45, %v457_v42  ;;  %v472_v56 = vrot.slane %v470_v47, 4  ;;  %v489_v57 = vshll.u32 %v333_v44, 16 }
  0x30   : > { %1781 = vmatpush3.bf16.msra.mxu0 %v1014_v40  ;;  %1768 = vmatprep.mubr.msk.bf16.mxu0 %vm565_vm1, %v2075_v50  ;;  %v2149_v59 = vcombine.low %v328_v13, %v329_v18  ;;  %v475_v60 = vrot.slane %v473_v49, 5  ;;  %v481_v61 = vrot.slane %v479_v28, 5  ;;  %v485_v36 = vrot.slane %v483_v51, 4 }
  0x31   : > { %v458_v62 = vsel %vm2082_vm4, %v453_v53, %v457_v42  ;;  %v463_v63 = vrot.slane %v462_v54, 4  ;;  %v491_v0 = vrot.slane %v489_v57, 5  ;;  %v494_v2 = vshrl.u32 %v2136_v52, 16  ;;  %v340_v54 = vld [vmem:[%s301_s27] sm:$0xf] }
  0x32   : > { %1733 = vmatmul.mubr.msk.bf16.gmra.mrb[4].mxu1 %vm565_vm1, %v2133_v1  ;;  %v476_v3 = vor.u32 %v475_v60, %v472_v56  ;;  %v486_v4 = vor.u32 %v485_v36, %v481_v61  ;;  %v497_v50 = vshll.u32 %v2136_v52, 16  ;;  %v503_v5 = vshll.u32 %v335_v58, 16  ;;  %v341_v56 = vld [vmem:[%s301_s27 + $0x4] sm:$0xf] }
  0x33   : > { %v468_v8 = vsel %vm2082_vm4, %v463_v63, %v467_v48  ;;  %v1601_v9 = vcombine.low %v331_v33, %v332_v39  ;;  %v496_v10 = vrot.slane %v494_v2, 4  ;;  %v507_v11 = vshrl.u32 %v335_v58, 16  ;;  %v342_v2 = vld [vmem:[%s301_s27 + $0x8] sm:$0x1] }
  0x34   : > { %v2162_v12 = vcombine.low %v458_v62, %v468_v8  ;;  %v477_v13 = vrot.slane %v476_v3, 4  ;;  %v487_v14 = vrot.slane %v486_v4, 4  ;;  %v499_v15 = vrot.slane %v497_v50, 5 }
  0x35   : > { %v505_v16 = vrot.slane %v503_v5, 5  ;;  %v509_v17 = vrot.slane %v507_v11, 4  ;;  %v513_v18 = vshll.u32 %v336_v6, 16  ;;  %v518_v21 = vshrl.u32 %v337_v7, 16 }
  0x36   : > { %1736 = vmatprep.mubr.msk.bf16.mxu1 %vm565_vm1, %v2162_v12  ;;  %v482_v22 = vsel %vm2082_vm4, %v477_v13, %v481_v61  ;;  %v492_v23 = vsel %vm2082_vm4, %v487_v14, %v491_v0  ;;  %v500_v24 = vor.u32 %v499_v15, %v496_v10  ;;  %v521_v26 = vshll.u32 %v337_v7, 16 }
  0x37   : > { %1769 = vmatmul.mubr.msk.bf16.gmra.mrb[4].mxu0 %vm565_vm1, %v2149_v59  ;;  %v1585_v27 = vcombine.low %v482_v22, %v492_v23  ;;  %v510_v30 = vor.u32 %v509_v17, %v505_v16  ;;  %v515_v31 = vrot.slane %v513_v18, 5  ;;  %v520_v32 = vrot.slane %v518_v21, 4 }
  0x38   : > { %1772 = vmatprep.mubr.msk.bf16.mxu0 %vm565_vm1, %v1601_v9  ;;  %v501_v33 = vrot.slane %v500_v24, 4  ;;  %v523_v34 = vrot.slane %v521_v26, 5  ;;  %v527_v35 = vshll.u32 %v338_v20, 16  ;;  %v531_v37 = vshrl.u32 %v338_v20, 16 }
  0x39   : > { %v511_v38 = vrot.slane %v510_v30, 4  ;;  %v537_v39 = vshll.u32 %v339_v25, 16  ;;  %v1602_v44 = vcombine.low %v2136_v52, %v335_v58  ;;  %v1603_v46 = vcombine.low %v337_v7, %v338_v20 }
  0x3a   : > { %1737 = vmatmul.mubr.msk.bf16.gmra.mrb[8].mxu1 %vm565_vm1, %v1585_v27  ;;  %v506_v40 = vsel %vm2082_vm4, %v501_v33, %v505_v16  ;;  %v524_v41 = vor.u32 %v523_v34, %v520_v32  ;;  %v529_v42 = vrot.slane %v527_v35, 5  ;;  %v533_v43 = vrot.slane %v531_v37, 4 }
  0x3b   : > { %v516_v45 = vsel %vm2082_vm4, %v511_v38, %v515_v31  ;;  %v539_v28 = vrot.slane %v537_v39, 5  ;;  %v1613_v58 = vcombine.low %v340_v54, %v341_v56  ;;  %v984_v60 = vshrl.u32 %v340_v54, 16 }
  0x3c   : > { %v1586_v47 = vcombine.low %v506_v40, %v516_v45  ;;  %v525_v48 = vrot.slane %v524_v41, 4  ;;  %v534_v49 = vor.u32 %v533_v43, %v529_v42  ;;  %v987_v61 = vshll.u32 %v340_v54, 16 }
  0x3d   : > { %v993_v36 = vshll.u32 %v341_v56, 16  ;;  %v997_v62 = vshrl.u32 %v341_v56, 16  ;;  %v1003_v4 = vshll.u32 %v342_v2, 16 }
  0x3e   : > { %1740 = vmatprep.mubr.msk.bf16.mxu1 %vm565_vm1, %v1586_v47  ;;  %v530_v51 = vsel %vm2082_vm4, %v525_v48, %v529_v42  ;;  %v535_v53 = vrot.slane %v534_v49, 4  ;;  %v989_v63 = vrot.slane %v987_v61, 5 }
  0x3f   : > { %1773 = vmatmul.mubr.msk.bf16.gmra.mrb[8].mxu0 %vm565_vm1, %v1602_v44  ;;  %v995_v0 = vrot.slane %v993_v36, 5  ;;  %v1005_v6 = vrot.slane %v1003_v4, 5 }
  0x40   : > { %v540_v52 = vsel %vm2082_vm4, %v535_v53, %v539_v28  ;;  %1776 = vmatprep.mubr.msk.bf16.mxu0 %vm565_vm1, %v1603_v46 }
  0x41   : > { %v1587_v57 = vcombine.low %v530_v51, %v540_v52 }
  0x43   : > { %1741 = vmatmul.mubr.msk.bf16.gmra.mrb[12].mxu1 %vm565_vm1, %v1587_v57 }
  0x44   : > { %1754 = vmatprep.mubr.msk.bf16.mxu1 %vm565_vm1, %v2149_v59  ;;  %v986_v59 = vrot.slane %v984_v60, 4 }
  0x47   : > { %1777 = vmatmul.mubr.msk.bf16.gmra.mrb[12].mxu0 %vm565_vm1, %v1613_v58 }
  0x48   : > { %1782 = vmatprep.mubr.msk.bf16.mxu0 %vm565_vm1, %v2101_v19  ;;  %v999_v19 = vrot.slane %v997_v62, 4 }
  0x4a   : > { %v1000_v3 = vor.u32 %v999_v19, %v995_v0 }
  0x4b   : > { %1755 = vmatmul.mubr.msk.bf16.vlgmr.msra.gmra.mrb[8].mxu1 %vm565_vm1, %v1601_v9  ;;  %v1923_v9 = vld [vmem:[%s2300_s3] sm:$0xff]  }
  0x4c   : > { %1758 = vmatprep.mubr.msk.bf16.mxu1 %vm565_vm1, %v1602_v44  ;;  %v1001_v5 = vrot.slane %v1000_v3, 4  ;;  %1798 = vmatprep.subr.bf16.mxu1 %v1923_v9 }
  0x4d   : > { %1799 = vmatpush3.bf16.msra.mxu1 %v1923_v9 }
  0x4e   : > { %v1006_v7 = vsel %vm2082_vm4, %v1001_v5, %v1005_v6 }
  0x4f   : > { %1783 = vmatmul.mubr.msk.bf16.vlgmr.msra.gmra.mrb[0].mxu0 %vm565_vm1, %v2113_v29  ;;  %v990_v29 = vor.u32 %v989_v63, %v986_v59 }
  0x50   : > { %1786 = vmatprep.mubr.msk.bf16.mxu0 %vm565_vm1, %v2133_v1 }
  0x51   : > { %v991_v50 = vrot.slane %v990_v29, 4 }
  0x53   : > { %1759 = vmatmul.mubr.msk.bf16.gmra.mrb[12].mxu1 %vm565_vm1, %v1603_v46  ;;  %v996_v1 = vsel %vm2082_vm4, %v991_v50, %v995_v0 }
  0x54   : > { %v1623_v8 = vcombine.low %v996_v1, %v1006_v7 }
  0x57   : > { %1787 = vmatmul.mubr.msk.bf16.gmra.mrb[4].mxu0 %vm565_vm1, %v2162_v12 }
  0x58   : > { %1790 = vmatprep.mubr.msk.bf16.mxu0 %vm565_vm1, %v1585_v27 }
  0x5f   : > { %1791 = vmatmul.mubr.msk.bf16.gmra.mrb[8].mxu0 %vm565_vm1, %v1586_v47 }
  0x60   : > { %1794 = vmatprep.mubr.msk.bf16.mxu0 %vm565_vm1, %v1587_v57 }
  0x67   : > { %1795 = vmatmul.mubr.msk.bf16.gmra.mrb[12].mxu0 %vm565_vm1, %v1623_v8 }
  0xfd   : > { %v1730_v10 = vpop.f32.mrb[0].mxu1 }
  0xfe   : > { %v628_v11 = vpop.f32.mrb[1].mxu1 }
  0xff   : > { %v1731_v12 = vpop.f32.mrb[2].mxu1 }
 0x100   : > { %v631_v13 = vpop.f32.mrb[3].mxu1 }
 0x105   : > { %v1734_v14 = vpop.f32.mrb[4].mxu1 }
 0x106   : > { %v644_v15 = vpop.f32.mrb[5].mxu1 }
 0x107   : > { %v1735_v16 = vpop.f32.mrb[6].mxu1 }
 0x108   : > { %v647_v17 = vpop.f32.mrb[7].mxu1 }
 0x11e   : > { %v1756_v18 = vpop.f32.mrb[8].mxu1 }
 0x11f   : > { %v824_v55 = vpop.f32.mrb[9].mxu1 }
 0x120   : > { %v1757_v20 = vpop.f32.mrb[10].mxu1 }
 0x121   : > { %v2219_v21 = vpop.f32.mrb[11].mxu1 }
 0x122   : > { %v1784_v22 = vpop.f32.mrb[0].mxu0 }
 0x123   : > { %v1818_v23 = vadd.f32 %v1784_v22, %v1730_v10  ;;  %v1050_v24 = vpop.f32.mrb[1].mxu0 }
 0x124   : > { %v1819_v25 = vadd.f32 %v1050_v24, %v628_v11  ;;  %v1785_v26 = vpop.f32.mrb[2].mxu0 }
 0x125   : > { %v1147_v27 = vmul.f32 0.01, %v1818_v23  ;;  %v1820_v30 = vadd.f32 %v1785_v26, %v1731_v12  ;;  %v1053_v31 = vpop.f32.mrb[3].mxu0  ;;  %vm1131_vm5 = vcmp.gt.f32.partialorder %v1818_v23, 0.0 }
 0x126   : > { %v1145_v32 = vmul.f32 0.01, %v1819_v25  ;;  %v1821_v33 = vadd.f32 %v1053_v31, %v631_v13  ;;  %v2221_v34 = vpop.f32.mrb[12].mxu1  ;;  %vm1129_vm6 = vcmp.gt.f32.partialorder %v1819_v25, 0.0 }
 0x127   : > { %vm1132_vm7 = vcmp.gt.f32.partialorder %v1820_v30, 0.0  ;;  %v1148_v35 = vmul.f32 0.01, %v1820_v30  ;;  %v2223_v37 = vpop.f32.mrb[13].mxu1  ;;  %v1163_v40 = vsel %vm1131_vm5, %v1818_v23, %v1147_v27 }
 0x128   : > { %vm1130_vm8 = vcmp.gt.f32.partialorder %v1821_v33, 0.0  ;;  %v1146_v38 = vmul.f32 0.01, %v1821_v33  ;;  %v2225_v39 = vpop.f32.mrb[14].mxu1  ;;  %v1161_v43 = vsel %vm1129_vm6, %v1819_v25, %v1145_v32 }
 0x129   : > { %v1164_v41 = vsel %vm1132_vm7, %v1820_v30, %v1148_v35  ;;  %v2227_v42 = vpop.f32.mrb[15].mxu1 }
 0x12a   : > { %v1178_v44 = vpack.c.bf16 %v1164_v41, %v1163_v40  ;;  %v1162_v45 = vsel %vm1130_vm8, %v1821_v33, %v1146_v38  ;;  %v1788_v46 = vpop.f32.mrb[4].mxu0  ;;  %vm1427_vm8 = vcmask 257024  }
 0x12b   : > { %v1177_v47 = vpack.c.bf16 %v1162_v45, %v1161_v43  ;;  %v1822_v48 = vadd.f32 %v1788_v46, %v1734_v14  ;;  %v1066_v49 = vpop.f32.mrb[5].mxu0 }
 0x12c   : > { %v1823_v28 = vadd.f32 %v1066_v49, %v644_v15  ;;  %v1789_v51 = vpop.f32.mrb[6].mxu0 }
 0x12d   : > { %v1151_v53 = vmul.f32 0.01, %v1822_v48  ;;  %v1824_v52 = vadd.f32 %v1789_v51, %v1735_v16  ;;  %v1069_v54 = vpop.f32.mrb[7].mxu0  ;;  %1800 = vmatprep.mubr.msk.bf16.mxu1 %vm1193_vm9, %v1177_v47  ;;  %vm1135_vm10 = vcmp.gt.f32.partialorder %v1822_v48, 0.0 }
 0x12e   : > { %v1149_v56 = vmul.f32 0.01, %v1823_v28  ;;  %v1825_v57 = vadd.f32 %v1069_v54, %v647_v17  ;;  %1801 = vmatmul.mubr.msk.bf16.vlgmr.msra.gmra.mrb[16].mxu1 %vm1193_vm9, %v1178_v44  ;;  %vm1133_vm11 = vcmp.gt.f32.partialorder %v1823_v28, 0.0 }
 0x12f   : > { %vm1136_vm12 = vcmp.gt.f32.partialorder %v1824_v52, 0.0  ;;  %v1152_v58 = vmul.f32 0.01, %v1824_v52  ;;  %v1167_v61 = vsel %vm1135_vm10, %v1822_v48, %v1151_v53 }
 0x130   : > { %vm1134_vm13 = vcmp.gt.f32.partialorder %v1825_v57, 0.0  ;;  %v1150_v60 = vmul.f32 0.01, %v1825_v57  ;;  %v1165_v62 = vsel %vm1133_vm11, %v1823_v28, %v1149_v56 }
 0x131   : > { %v1168_v36 = vsel %vm1136_vm12, %v1824_v52, %v1152_v58 }
 0x132   : > { %v1180_v59 = vpack.c.bf16 %v1168_v36, %v1167_v61  ;;  %v1166_v63 = vsel %vm1134_vm13, %v1825_v57, %v1150_v60  ;;  %v1792_v0 = vpop.f32.mrb[8].mxu0 }
 0x133   : > { %v1179_v19 = vpack.c.bf16 %v1166_v63, %v1165_v62  ;;  %v1826_v2 = vadd.f32 %v1792_v0, %v1756_v18  ;;  %v1082_v29 = vpop.f32.mrb[9].mxu0 }
 0x134   : > { %v1827_v3 = vadd.f32 %v1082_v29, %v824_v55  ;;  %v1793_v4 = vpop.f32.mrb[10].mxu0 }
 0x135   : > { %v1155_v50 = vmul.f32 0.01, %v1826_v2  ;;  %v1828_v5 = vadd.f32 %v1793_v4, %v1757_v20  ;;  %v1085_v6 = vpop.f32.mrb[11].mxu0  ;;  %1804 = vmatprep.mubr.msk.bf16.mxu1 %vm1193_vm9, %v1179_v19  ;;  %vm1139_vm14 = vcmp.gt.f32.partialorder %v1826_v2, 0.0 }
 0x136   : > { %v1153_v1 = vmul.f32 0.01, %v1827_v3  ;;  %v1829_v7 = vadd.f32 %v1085_v6, %v2219_v21  ;;  %1805 = vmatmul.mubr.msk.bf16.gmra.mrb[20].mxu1 %vm1193_vm9, %v1180_v59  ;;  %vm1137_vm15 = vcmp.gt.f32.partialorder %v1827_v3, 0.0 }
 0x137   : > { %vm1140_vm0 = vcmp.gt.f32.partialorder %v1828_v5, 0.0  ;;  %v1156_v8 = vmul.f32 0.01, %v1828_v5  ;;  %v1171_v10 = vsel %vm1139_vm14, %v1826_v2, %v1155_v50 }
 0x138   : > { %vm1138_vm1 = vcmp.gt.f32.partialorder %v1829_v7, 0.0  ;;  %v1154_v9 = vmul.f32 0.01, %v1829_v7  ;;  %v1169_v12 = vsel %vm1137_vm15, %v1827_v3, %v1153_v1 }
 0x139   : > { %v1172_v11 = vsel %vm1140_vm0, %v1828_v5, %v1156_v8 }
 0x13a   : > { %v1182_v13 = vpack.c.bf16 %v1172_v11, %v1171_v10  ;;  %v1170_v14 = vsel %vm1138_vm1, %v1829_v7, %v1154_v9  ;;  %v1796_v15 = vpop.f32.mrb[12].mxu0 }
 0x13b   : > { %v1181_v16 = vpack.c.bf16 %v1170_v14, %v1169_v12  ;;  %v1830_v17 = vadd.f32 %v1796_v15, %v2221_v34  ;;  %v1098_v18 = vpop.f32.mrb[13].mxu0 }
 0x13c   : > { %v1831_v55 = vadd.f32 %v1098_v18, %v2223_v37  ;;  %v1797_v20 = vpop.f32.mrb[14].mxu0 }
 0x13d   : > { %v1159_v21 = vmul.f32 0.01, %v1830_v17  ;;  %v1832_v22 = vadd.f32 %v1797_v20, %v2225_v39  ;;  %v1101_v23 = vpop.f32.mrb[15].mxu0  ;;  %1808 = vmatprep.mubr.msk.bf16.mxu1 %vm1193_vm9, %v1181_v16  ;;  %vm1143_vm2 = vcmp.gt.f32.partialorder %v1830_v17, 0.0 }
 0x13e   : > { %v1157_v24 = vmul.f32 0.01, %v1831_v55  ;;  %v1833_v25 = vadd.f32 %v1101_v23, %v2227_v42  ;;  %1809 = vmatmul.mubr.msk.bf16.gmra.mrb[24].mxu1 %vm1193_vm9, %v1182_v13  ;;  %vm1141_vm3 = vcmp.gt.f32.partialorder %v1831_v55, 0.0 }
 0x13f   : > { %vm1144_vm4 = vcmp.gt.f32.partialorder %v1832_v22, 0.0  ;;  %v1160_v26 = vmul.f32 0.01, %v1832_v22  ;;  %v1175_v30 = vsel %vm1143_vm2, %v1830_v17, %v1159_v21 }
 0x140   : > { %vm1142_vm5 = vcmp.gt.f32.partialorder %v1833_v25, 0.0  ;;  %v1158_v27 = vmul.f32 0.01, %v1833_v25  ;;  %v1173_v32 = vsel %vm1141_vm3, %v1831_v55, %v1157_v24 }
 0x141   : > { %v1176_v31 = vsel %vm1144_vm4, %v1832_v22, %v1160_v26 }
 0x142   : > { %v1184_v33 = vpack.c.bf16 %v1176_v31, %v1175_v30  ;;  %v1174_v34 = vsel %vm1142_vm5, %v1833_v25, %v1158_v27 }
 0x143   : > { %v1183_v35 = vpack.c.bf16 %v1174_v34, %v1173_v32 }
 0x145   : > { %1812 = vmatprep.mubr.msk.bf16.mxu1 %vm1193_vm9, %v1183_v35 }
 0x146   : > { %1813 = vmatmul.mubr.msk.bf16.gmra.mrb[28].mxu1 %vm1193_vm9, %v1184_v33 }
 0x201   : > { %v1802_v37 = vpop.f32.mrb[16].mxu1 }
 0x202   : > { %vm1317_vm6 = vcmp.gt.f32.partialorder %v1802_v37, 0.0  ;;  %v1333_v38 = vmul.f32 0.01, %v1802_v37  ;;  %v1252_v39 = vpop.f32.mrb[17].mxu1 }
 0x203   : > { %vm1315_vm7 = vcmp.gt.f32.partialorder %v1252_v39, 0.0  ;;  %v1331_v40 = vmul.f32 0.01, %v1252_v39  ;;  %v1803_v41 = vpop.f32.mrb[18].mxu1 }
 0x204   : > { %v1349_v42 = vsel %vm1317_vm6, %v1802_v37, %v1333_v38  ;;  %vm1318_vm9 = vcmp.gt.f32.partialorder %v1803_v41, 0.0  ;;  %v1334_v43 = vmul.f32 0.01, %v1803_v41  ;;  %v1255_v44 = vpop.f32.mrb[19].mxu1 }
 0x205   : > { %v1667_v45 = vpack.c.bf16 %v1349_v42, %v1349_v42  ;;  %v1347_v46 = vsel %vm1315_vm7, %v1252_v39, %v1331_v40  ;;  %vm1316_vm10 = vcmp.gt.f32.partialorder %v1255_v44, 0.0  ;;  %v1332_v47 = vmul.f32 0.01, %v1255_v44 }
 0x206   : > { %v1665_v48 = vpack.c.bf16 %v1347_v46, %v1347_v46  ;;  %v1350_v49 = vsel %vm1318_vm9, %v1803_v41, %v1334_v43 }
 0x207   : > { %1430 = vst.msk [vmem:[%s2248_s10 + $0x8] sm:$0xf] %vm1427_vm8, %v1667_v45  ;;  %v1668_v28 = vpack.c.bf16 %v1350_v49, %v1350_v49  ;;  %v1348_v51 = vsel %vm1316_vm10, %v1255_v44, %v1332_v47 }
 0x208   : > { %1428 = vst.msk [vmem:[%s2248_s10] sm:$0xf] %vm1427_vm8, %v1665_v48  ;;  %v1666_v53 = vpack.c.bf16 %v1348_v51, %v1348_v51 }
 0x209   : > { %1431 = vst.msk [vmem:[%s2248_s10 + $0xc] sm:$0xf] %vm1427_vm8, %v1668_v28  ;;  %v1806_v52 = vpop.f32.mrb[20].mxu1 }
 0x20a   : > { %1429 = vst.msk [vmem:[%s2248_s10 + $0x4] sm:$0xf] %vm1427_vm8, %v1666_v53  ;;  %vm1321_vm11 = vcmp.gt.f32.partialorder %v1806_v52, 0.0  ;;  %v1337_v54 = vmul.f32 0.01, %v1806_v52  ;;  %v1268_v56 = vpop.f32.mrb[21].mxu1 }
 0x20b   : > { %vm1319_vm12 = vcmp.gt.f32.partialorder %v1268_v56, 0.0  ;;  %v1335_v57 = vmul.f32 0.01, %v1268_v56  ;;  %v1807_v58 = vpop.f32.mrb[22].mxu1 }
 0x20c   : > { %v1353_v60 = vsel %vm1321_vm11, %v1806_v52, %v1337_v54  ;;  %vm1322_vm13 = vcmp.gt.f32.partialorder %v1807_v58, 0.0  ;;  %v1338_v61 = vmul.f32 0.01, %v1807_v58  ;;  %v1271_v36 = vpop.f32.mrb[23].mxu1 }
 0x20d   : > { %v1671_v62 = vpack.c.bf16 %v1353_v60, %v1353_v60  ;;  %v1351_v59 = vsel %vm1319_vm12, %v1268_v56, %v1335_v57  ;;  %vm1320_vm14 = vcmp.gt.f32.partialorder %v1271_v36, 0.0  ;;  %v1336_v63 = vmul.f32 0.01, %v1271_v36 }
 0x20e   : > { %v1669_v0 = vpack.c.bf16 %v1351_v59, %v1351_v59  ;;  %v1354_v19 = vsel %vm1322_vm13, %v1807_v58, %v1338_v61 }
 0x20f   : > { %1434 = vst.msk [vmem:[%s2248_s10 + $0x18] sm:$0xf] %vm1427_vm8, %v1671_v62  ;;  %v1672_v2 = vpack.c.bf16 %v1354_v19, %v1354_v19  ;;  %v1352_v29 = vsel %vm1320_vm14, %v1271_v36, %v1336_v63 }
 0x210   : > { %1432 = vst.msk [vmem:[%s2248_s10 + $0x10] sm:$0xf] %vm1427_vm8, %v1669_v0  ;;  %v1670_v3 = vpack.c.bf16 %v1352_v29, %v1352_v29 }
 0x211   : > { %1435 = vst.msk [vmem:[%s2248_s10 + $0x1c] sm:$0xf] %vm1427_vm8, %v1672_v2  ;;  %v1810_v4 = vpop.f32.mrb[24].mxu1 }
 0x212   : > { %1433 = vst.msk [vmem:[%s2248_s10 + $0x14] sm:$0xf] %vm1427_vm8, %v1670_v3  ;;  %vm1325_vm15 = vcmp.gt.f32.partialorder %v1810_v4, 0.0  ;;  %v1341_v50 = vmul.f32 0.01, %v1810_v4  ;;  %v1284_v5 = vpop.f32.mrb[25].mxu1 }
 0x213   : > { %vm1323_vm0 = vcmp.gt.f32.partialorder %v1284_v5, 0.0  ;;  %v1339_v6 = vmul.f32 0.01, %v1284_v5  ;;  %v1811_v1 = vpop.f32.mrb[26].mxu1 }
 0x214   : > { %v1357_v7 = vsel %vm1325_vm15, %v1810_v4, %v1341_v50  ;;  %vm1326_vm1 = vcmp.gt.f32.partialorder %v1811_v1, 0.0  ;;  %v1342_v8 = vmul.f32 0.01, %v1811_v1  ;;  %v1287_v9 = vpop.f32.mrb[27].mxu1 }
 0x215   : > { %v1675_v10 = vpack.c.bf16 %v1357_v7, %v1357_v7  ;;  %v1355_v11 = vsel %vm1323_vm0, %v1284_v5, %v1339_v6  ;;  %vm1324_vm2 = vcmp.gt.f32.partialorder %v1287_v9, 0.0  ;;  %v1340_v12 = vmul.f32 0.01, %v1287_v9 }
 0x216   : > { %v1673_v13 = vpack.c.bf16 %v1355_v11, %v1355_v11  ;;  %v1358_v14 = vsel %vm1326_vm1, %v1811_v1, %v1342_v8 }
 0x217   : > { %1438 = vst.msk [vmem:[%s2248_s10 + $0x28] sm:$0xf] %vm1427_vm8, %v1675_v10  ;;  %v1676_v15 = vpack.c.bf16 %v1358_v14, %v1358_v14  ;;  %v1356_v16 = vsel %vm1324_vm2, %v1287_v9, %v1340_v12 }
 0x218   : > { %1436 = vst.msk [vmem:[%s2248_s10 + $0x20] sm:$0xf] %vm1427_vm8, %v1673_v13  ;;  %v1674_v17 = vpack.c.bf16 %v1356_v16, %v1356_v16 }
 0x219   : > { %1439 = vst.msk [vmem:[%s2248_s10 + $0x2c] sm:$0xf] %vm1427_vm8, %v1676_v15  ;;  %v1814_v18 = vpop.f32.mrb[28].mxu1 }
 0x21a   : > { %1437 = vst.msk [vmem:[%s2248_s10 + $0x24] sm:$0xf] %vm1427_vm8, %v1674_v17  ;;  %vm1329_vm3 = vcmp.gt.f32.partialorder %v1814_v18, 0.0  ;;  %v1345_v55 = vmul.f32 0.01, %v1814_v18  ;;  %v1300_v20 = vpop.f32.mrb[29].mxu1 }
 0x21b   : > { %vm1327_vm4 = vcmp.gt.f32.partialorder %v1300_v20, 0.0  ;;  %v1343_v21 = vmul.f32 0.01, %v1300_v20  ;;  %v1815_v22 = vpop.f32.mrb[30].mxu1 }
 0x21c   : > { %v1361_v23 = vsel %vm1329_vm3, %v1814_v18, %v1345_v55  ;;  %vm1330_vm5 = vcmp.gt.f32.partialorder %v1815_v22, 0.0  ;;  %v1346_v24 = vmul.f32 0.01, %v1815_v22  ;;  %v1303_v25 = vpop.f32.mrb[31].mxu1 }
 0x21d   : > { %v1679_v26 = vpack.c.bf16 %v1361_v23, %v1361_v23  ;;  %v1359_v27 = vsel %vm1327_vm4, %v1300_v20, %v1343_v21  ;;  %vm1328_vm6 = vcmp.gt.f32.partialorder %v1303_v25, 0.0  ;;  %v1344_v30 = vmul.f32 0.01, %v1303_v25 }
 0x21e   : > { %v1677_v31 = vpack.c.bf16 %v1359_v27, %v1359_v27  ;;  %v1362_v32 = vsel %vm1330_vm5, %v1815_v22, %v1346_v24 }
 0x21f   : > { %1442 = vst.msk [vmem:[%s2248_s10 + $0x38] sm:$0xf] %vm1427_vm8, %v1679_v26  ;;  %v1680_v33 = vpack.c.bf16 %v1362_v32, %v1362_v32  ;;  %v1360_v34 = vsel %vm1328_vm6, %v1303_v25, %v1344_v30 }
 0x220   : > { %1440 = vst.msk [vmem:[%s2248_s10 + $0x30] sm:$0xf] %vm1427_vm8, %v1677_v31  ;;  %v1678_v35 = vpack.c.bf16 %v1360_v34, %v1360_v34 }
 0x221   : > { %1443 = vst.msk [vmem:[%s2248_s10 + $0x3c] sm:$0xf] %vm1427_vm8, %v1680_v33 }
 0x222   : > { %1441 = vst.msk [vmem:[%s2248_s10 + $0x34] sm:$0xf] %vm1427_vm8, %v1678_v35 }
 0x223 PF: > { %s14_s19 = sadd.s32 1, %s1962_s19   ;;  %s2305_s15 = smov %s1954_s17 }
 0x224   : > { %p11_p9 = scmp.ge.s32.totalorder %s14_s19, 6   ;;  %s2306_s16 = smov %s1958_s18 }
 0x225   : > { %s2307_s17 = smov %s2310_s20  ;;  %s2308_s18 = smov %s2314_s21 }
 0x226   :  { %13 = sbr.rel (!%p11_p9) target bundleno = 3 (0x3), region = 72 }

</bundles_post_ra>
